<compile_context>
chip_gen: v7x
topology: tpu7x:2x2x1
jax: 0.10.0
libtpu: 0.0.40
codegen_flags: <defaults>
</compile_context>

<pallas_src>
import jax
import jax.numpy as jnp
import numpy as np
from jax import lax
from jax.experimental import pallas as pl
from jax.experimental.pallas import tpu as pltpu


def _make_kernel(b: int, inc: int):
    # b / inc are plain Python ints -> jaxpr literals (no captured device consts).
    b_i = int(b)
    inc_i = int(inc)
    is_pow2 = (inc_i & (inc_i - 1)) == 0
    shift = inc_i.bit_length() - 1

    def kernel(c_ref, o_ref):
        c = c_ref[...].astype(jnp.int32)   # no-op when input is already int32
        n = c - b_i
        if inc_i == 1:
            q = n + 1
        elif is_pow2:
            # quotient only used where c >= b (n >= 0), so arithmetic shift == floor-div
            q = (n >> shift) + 1
        else:
            # TODO(synk): magic multiply-shift for non-power-of-two inc; exact
            # lax.div kept (HBM-bound kernel, divide is not the bottleneck).
            q = lax.div(n, np.int32(inc_i)) + 1
        o_ref[...] = jnp.where(c < b_i, 0, q)

    return kernel


def querytask_bi_incj(c: jax.Array, b: int, inc: int) -> jax.Array:
    """Elementwise Pallas kernel equivalent of querytask_Bi_INCj.forward."""
    b = int(b)
    inc = int(inc)
    if inc <= 0:
        raise ValueError("inc must be > 0 (torch floor-division semantics assumed).")

    orig_shape = c.shape
    total = int(c.size)
    if total == 0:
        return jnp.zeros(orig_shape, jnp.int32)

    flat = c.reshape(-1)   # row-major flatten: bitcast for contiguous inputs

    # Widest lane-dense last dim dividing the element count (fallback 128 + jnp tail).
    LANE_W = 128
    for w in (4096, 2048, 1024, 512, 256, 128):
        if total % w == 0:
            LANE_W = w
            break
    rows = total // LANE_W
    tail = total - rows * LANE_W          # < 128; nonzero only when 128 does not divide total

    if rows == 0:
        # tiny input (< 128 elements): not worth a kernel launch
        t = flat.astype(jnp.int32)
        return jnp.where(t < b, 0, (t - b) // inc + 1).astype(jnp.int32).reshape(orig_shape)

    slab = flat[: rows * LANE_W].reshape(rows, LANE_W)

    in_itemsize = int(np.dtype(slab.dtype).itemsize)
    # sublane alignment for the native input tiling: 8 (32-bit), 16 (16-bit), 32 (8-bit)
    align = max(8, 32 // max(1, in_itemsize))

    # ~1M elements per block (~4 MiB int32): large enough to amortize per-step
    # overhead, small enough that 2-deep pipelining of in+out stays ~16 MiB VMEM.
    TARGET_BLOCK_ELEMS = 1024 * 1024
    block_rows = max(align, (TARGET_BLOCK_ELEMS // LANE_W) // align * align)
    if block_rows >= rows:
        if rows >= 2 * align:
            # keep >= 2 grid steps so both v7x TensorCores participate
            block_rows = max(align, (rows // 2) // align * align)
        else:
            block_rows = rows             # full-dim block: always legal
    grid = (pl.cdiv(rows, block_rows),)

    block_elems = block_rows * LANE_W
    # VMEM budget: double-buffered input (native dtype) + output (int32) + margin.
    vmem_limit = int(2 * block_elems * (in_itemsize + 4) + (8 << 20))

    out_slab = pl.pallas_call(
        _make_kernel(b, inc),
        out_shape=jax.ShapeDtypeStruct((rows, LANE_W), jnp.int32),
        grid_spec=pltpu.PrefetchScalarGridSpec(
            num_scalar_prefetch=0,
            grid=grid,
            in_specs=[pl.BlockSpec((block_rows, LANE_W), lambda i: (i, 0))],
            out_specs=pl.BlockSpec((block_rows, LANE_W), lambda i: (i, 0)),
        ),
        compiler_params=pltpu.CompilerParams(
            dimension_semantics=("parallel",),
            vmem_limit_bytes=vmem_limit,
        ),
    )(slab)

    out_flat = out_slab.reshape(-1)
    if tail:
        t = flat[rows * LANE_W:].astype(jnp.int32)
        out_tail = jnp.where(t < b, 0, (t - b) // inc + 1).astype(jnp.int32)
        out_flat = jnp.concatenate([out_flat, out_tail])
    # torch .long() -> int64; keep int32 on TPU (see note above)
    return out_flat.reshape(orig_shape)


if __name__ == "__main__":
    # module "parameters" (constructor args) — deterministic, in-script
    b_param = 10
    inc_param = 3

    # small NCHW-style tensor of task indices
    key = jax.random.PRNGKey(0)
    c = jax.random.randint(key, shape=(2, 4, 16, 16), minval=0, maxval=100,
                           dtype=jnp.int32)

    out = querytask_bi_incj(c, b_param, inc_param)
    out = jax.block_until_ready(out)

    # reference check in plain JAX (same semantics as the torch module)
    ref = jnp.where(c < b_param, 0, (c - b_param) // inc_param + 1).astype(jnp.int32)
    assert out.shape == c.shape
    assert out.dtype == jnp.int32
    assert bool(jnp.all(out == ref))

    print("KERNEL_OK")
</pallas_src>

<mosaic_0001>
module attributes {stable_mosaic.version = 11 : i64} {
  func.func @kernel(%arg0: i32, %arg1: memref<1x2048xi32, #tpu.memory_space<vmem>>, %arg2: memref<1x2048xi32, #tpu.memory_space<vmem>>) attributes {dimension_semantics = [#tpu.dimension_semantics<parallel>], iteration_bounds = array<i64: 1>, scalar_prefetch = 0 : i64, scratch_operands = 0 : i64, tpu.core_type = #tpu.core_type<tc>, window_params = [{transform_indices = @transform_0, window_bounds = array<i64: 1, 2048>}, {transform_indices = @transform_1, window_bounds = array<i64: 1, 2048>}]} {
    %c0 = arith.constant 0 : index
    %c0_0 = arith.constant 0 : index
    %0 = vector.load %arg1[%c0, %c0_0] : memref<1x2048xi32, #tpu.memory_space<vmem>>, vector<1x2048xi32>
    %c10_i32 = arith.constant 10 : i32
    %1 = vector.broadcast %c10_i32 : i32 to vector<1x2048xi32>
    %2 = arith.subi %0, %1 : vector<1x2048xi32>
    %c3_i32 = arith.constant 3 : i32
    %3 = vector.broadcast %c3_i32 : i32 to vector<1x2048xi32>
    %4 = arith.divsi %2, %3 : vector<1x2048xi32>
    %c1_i32 = arith.constant 1 : i32
    %5 = vector.broadcast %c1_i32 : i32 to vector<1x2048xi32>
    %6 = arith.addi %4, %5 : vector<1x2048xi32>
    %c10_i32_1 = arith.constant 10 : i32
    %7 = vector.broadcast %c10_i32_1 : i32 to vector<1x2048xi32>
    %8 = arith.cmpi slt, %0, %7 : vector<1x2048xi32>
    %c0_i32 = arith.constant 0 : i32
    %9 = vector.broadcast %c0_i32 : i32 to vector<1x2048xi32>
    %10 = arith.select %8, %9, %6 : vector<1x2048xi1>, vector<1x2048xi32>
    %c0_2 = arith.constant 0 : index
    %c0_3 = arith.constant 0 : index
    %11 = vector.load %arg2[%c0_2, %c0_3] : memref<1x2048xi32, #tpu.memory_space<vmem>>, vector<1x2048xi32>
    tpu.vector_store %arg2[%c0_2, %c0_3], %10 {strides = array<i32>} : memref<1x2048xi32, #tpu.memory_space<vmem>>, vector<1x2048xi32>,
    return
  }
  func.func @transform_0(%arg0: i32) -> (i32, i32) {
    %c0_i32 = arith.constant 0 : i32
    %c0_i32_0 = arith.constant 0 : i32
    return %arg0, %c0_i32 : i32, i32
  }
  func.func @transform_1(%arg0: i32) -> (i32, i32) {
    %c0_i32 = arith.constant 0 : i32
    %c0_i32_0 = arith.constant 0 : i32
    return %arg0, %c0_i32 : i32, i32
  }
}

</mosaic_0001>

<bundles_post_ra>
// kernel: tpu_custom_call.1
= control target key start
LH: loop header
LB: loop body
LE: loop exit
PB: predicated region body
PF: predicated region fallthrough
CT: control target
= control target key end

     0   :  { %6 = vsyncpa [#allocation3], 0  ;;  %s172_s0 = inlined_call_operand.hbm [shape: s32[1,2048], index: 0, kind: input, shape index: {}]   ;;  %s173_s1 = inlined_call_operand.hbm [shape: s32[1,2048], index: 1, kind: output, shape index: {}]  }
   0x1   :  { %7 = vsyncpa [#allocation4], 0  ;;  %s128_s6 = smov [#allocation2]   ;;  %s80_s10 = scalar_lea.hbm %s172_s0, 256 }
   0x2   :  { %s14_s7 = sshll.u32 %s128_s6, 4  ;;  %p81_p0 = scmp.ne.s32.totalorder %s172_s0, %s80_s10  ;;  %s15_s7 = int_to_ptr.vmem [resolvable:$true] %s14_s7 }
   0x3   :  { %p84_p1 = scmp.lt.u32.totalorder %s80_s10, %s172_s0 }
   0x5   :  { %p86_p2 = pnand %p84_p1, %p81_p0 }
   0x7   :  { %89 = shalt.err (!%p86_p2)
}
   0x8   :  { %s90_s15 = scalar_lea.vmem %s15_s7, 256  ;;  %p95_p4 = scmp.lt.s32.totalorder %s15_s7, %s15_s7 }
   0x9   :  { %p91_p3 = scmp.ne.s32.totalorder %s15_s7, %s90_s15  ;;  %p96_p5 = scmp.lt.s32.totalorder %s90_s15, %s90_s15 }
   0xb   :  { %p97_p6 = por %p96_p5, %p95_p4 }
   0xd   :  { %p98_p7 = pnand %p97_p6, %p91_p3 }
   0xf   :  { %101 = shalt.err (!%p98_p7)
}
  0x10   :  { %17 = dma.hbm_to_vmem [thread:$0]  %s172_s0, 256, %s15_s7, [#allocation3]  }
  0x11   :  { %124 = dma.done.wait [#allocation3], 256  }
  0x12   :  { %125 = vsyncadd [#allocation3], 4294967040  ;;  %v21_v0 = vld [vmem:[#allocation2] sm:$0xff]  ;;  %v22_v1 = vld [vmem:[#allocation2 + $0x8] sm:$0xff]  ;;  %s129_s0 = smov [#allocation5]  }
  0x13   :  { %v70_v2 = vadd.s32 4294967286, %v21_v0  ;;  %v71_v3 = vadd.s32 4294967286, %v22_v1  ;;  %s61_s18 = sshll.u32 %s129_s0, 4  ;;  %vm49_vm2 = vcmp.lt.s32.totalorder %v21_v0, 10  ;;  %vm50_vm3 = vcmp.lt.s32.totalorder %v22_v1, 10  ;;  %s62_s18 = int_to_ptr.vmem [resolvable:$true] %s61_s18 }
  0x14   :  { %s102_s19 = scalar_lea.vmem %s62_s18, 256  ;;  %p107_p9 = scmp.lt.s32.totalorder %s62_s18, %s62_s18 }
  0x15   :  { %v26_v4 = vsub.s32 0, %v70_v2  ;;  %v37_v5 = vsub.s32 0, %v71_v3  ;;  %vm25_vm0 = vcmp.lt.s32.totalorder %v70_v2, 0  ;;  %vm36_vm1 = vcmp.lt.s32.totalorder %v71_v3, 0  ;;  %p103_p8 = scmp.ne.s32.totalorder %s62_s18, %s102_s19  ;;  %p108_p10 = scmp.lt.s32.totalorder %s102_s19, %s102_s19 }
  0x17   :  { %v72_v6 = vmin.u32 %v70_v2, %v26_v4  ;;  %v73_v7 = vmin.u32 %v71_v3, %v37_v5  ;;  %p109_p11 = por %p108_p10, %p107_p9 }
  0x19   :  { %v152_v8 = vmul.u32.u64.low 2863311531, %v72_v6  ;;  %v153_v9 = vmul.u32.u64.high 2863311531, %v72_v6, %v152_v8  ;;  %v155_v10 = vmul.u32.u64.low 2863311531, %v73_v7  ;;  %v156_v11 = vmul.u32.u64.high 2863311531, %v73_v7, %v155_v10  ;;  %p110_p12 = pnand %p109_p11, %p103_p8 }
  0x1b   :  { %v31_v12 = vshrl.u32 %v153_v9, 1  ;;  %v42_v13 = vshrl.u32 %v156_v11, 1 }
  0x1d   :  { %v34_v14 = vsub.s32 0, %v31_v12  ;;  %v45_v15 = vsub.s32 0, %v42_v13 }
  0x1f   :  { %v35_v16 = vsel %vm25_vm0, %v34_v14, %v31_v12  ;;  %v46_v17 = vsel %vm36_vm1, %v45_v15, %v42_v13 }
  0x20   :  { %v47_v18 = vadd.s32 1, %v35_v16  ;;  %v48_v19 = vadd.s32 1, %v46_v17 }
  0x22   :  { %v51_v20 = vsel %vm49_vm2, 0, %v47_v18  ;;  %v52_v21 = vsel %vm50_vm3, 0, %v48_v19 }
  0x23   :  { %53 = vst [vmem:[#allocation5] sm:$0xff] %v51_v20  ;;  %54 = vst [vmem:[#allocation5 + $0x8] sm:$0xff] %v52_v21 }
  0x24   :  { %113 = shalt.err (!%p110_p12)
}
  0x25   :  { %s114_s22 = scalar_lea.hbm %s173_s1, 256 }
  0x26   :  { %p115_p13 = scmp.ne.s32.totalorder %s173_s1, %s114_s22  ;;  %p118_p0 = scmp.lt.u32.totalorder %s114_s22, %s173_s1 }
  0x28   :  { %p120_p1 = pnand %p118_p0, %p115_p13 }
  0x2a   :  { %123 = shalt.err (!%p120_p1)
}
  0x2b   :  { %64 = dma.vmem_to_hbm [thread:$0]  %s62_s18, 256, %s173_s1, [#allocation4]  }
  0x2c   :  { %126 = dma.done.wait [#allocation4], 256  }
  0x2d   :  { %127 = vsyncadd [#allocation4], 4294967040 }
  0x2e   :  { %68 = vsyncpa [#allocation3], 1 }
  0x2f   :  { %69 = vsyncpa [#allocation4], 1 }

</bundles_post_ra>
